<compile_context>
chip_gen: v6e
topology: v6e:2x2x1
jax: 0.10.0
libtpu: 0.0.40
codegen_flags: <defaults>
</compile_context>

<pallas_src>
import functools
import math

import jax
import jax.numpy as jnp
from jax.experimental import pallas as pl
from jax.experimental.pallas import tpu as pltpu


# ----------------------------------------------------------------------------
# Helpers
# ----------------------------------------------------------------------------

_BN_EPS = 1e-5


def _round_up(x, m):
    return (x + m - 1) // m * m


def _gemm_tiles(M, Kp, Np):
    """Pick tile sizes for an (M, Kp) x (Kp, Np) GEMM (Kp, Np already 128-aligned)."""
    # K tile: single step when K fits (<=2048), else largest 128-multiple divisor.
    if Kp <= 2048:
        tk = Kp
    else:
        tk = 128
        for cand in (2304, 2048, 1536, 1152, 1024, 768, 640, 512, 384, 256):
            if Kp % cand == 0:
                tk = cand
                break
    # N tile: 256 when it still leaves >=2 N tiles; otherwise 128.
    tn = 256 if (Np % 256 == 0 and Np >= 512) else 128
    # M tile: up to 512 rows, 16-row granularity (bf16 sublane packing).
    Mp = _round_up(M, 16)
    tm = min(512, Mp)
    Mp = _round_up(Mp, tm)
    return Mp, tm, tk, tn


# ----------------------------------------------------------------------------
# Pallas kernels
# ----------------------------------------------------------------------------

def _gemm_kernel(a_ref, b_ref, c_ref, o_ref, acc_ref, *, activation):
    """Tiled GEMM: bf16 A/B, f32 accumulator, fused bias + activation epilogue."""
    @pl.when(pl.program_id(2) == 0)
    def _():
        acc_ref[...] = jnp.zeros_like(acc_ref)

    acc_ref[...] += jnp.dot(a_ref[...], b_ref[...], preferred_element_type=jnp.float32)

    @pl.when(pl.program_id(2) == pl.num_programs(2) - 1)
    def _():
        y = acc_ref[...] + c_ref[...]
        if activation == "relu":
            y = jnp.maximum(y, 0.0)
        o_ref[...] = y.astype(o_ref.dtype)


def _gemm_res_kernel(a_ref, b_ref, c_ref, r_ref, o_ref, acc_ref):
    """Same GEMM, but with residual add + ReLU fused into the epilogue (f32 math)."""
    @pl.when(pl.program_id(2) == 0)
    def _():
        acc_ref[...] = jnp.zeros_like(acc_ref)

    acc_ref[...] += jnp.dot(a_ref[...], b_ref[...], preferred_element_type=jnp.float32)

    @pl.when(pl.program_id(2) == pl.num_programs(2) - 1)
    def _():
        y = acc_ref[...] + c_ref[...] + r_ref[...].astype(jnp.float32)
        o_ref[...] = jnp.maximum(y, 0.0).astype(o_ref.dtype)


def _maxpool_kernel(p_ref, o_ref):
    # p_ref: (taps, rows, 128) -> elementwise max over the tap axis.
    o_ref[...] = jnp.max(p_ref[...], axis=0)


def _head_kernel(x_ref, w_ref, b_ref, o_ref):
    """Fused global-average-pool + fc + sigmoid. x:(N,HW,C), w:(C,Np), b:(1,Np)."""
    feats = jnp.mean(x_ref[...].astype(jnp.float32), axis=1)          # (N, C)
    y = jnp.dot(feats.astype(jnp.bfloat16), w_ref[...],
                preferred_element_type=jnp.float32) + c_bias(b_ref)
    o_ref[...] = 1.0 / (1.0 + jnp.exp(-y))


def c_bias(b_ref):
    return b_ref[...]


# ----------------------------------------------------------------------------
# Pallas wrappers
# ----------------------------------------------------------------------------

@functools.partial(jax.jit, static_argnames=("n_out", "activation", "out_dtype"))
def gemm_bias_act(a, b_p, bias_p, residual=None, *, n_out, activation="none",
                  out_dtype=jnp.bfloat16):
    """out = act(a @ b + bias [+ residual]).

    a: (M, K) any float dtype (cast to bf16).
    b_p: (Kp, Np) bf16, BN scale pre-folded, pre-padded.
    bias_p: (1, Np) f32.
    residual: optional (M, n_out); fused add + ReLU in the epilogue.
    """
    M, K = a.shape
    Kp, Np = b_p.shape
    assert Kp == _round_up(K, 128) and Np == _round_up(n_out, 128)
    Mp, tm, tk, tn = _gemm_tiles(M, Kp, Np)

    a_p = a.astype(jnp.bfloat16)
    if (Mp, Kp) != (M, K):
        a_p = jnp.pad(a_p, ((0, Mp - M), (0, Kp - K)))

    grid = (Mp // tm, Np // tn, Kp // tk)
    in_specs = [
        pl.BlockSpec((tm, tk), lambda i, j, k: (i, k)),
        pl.BlockSpec((tk, tn), lambda i, j, k: (k, j)),
        pl.BlockSpec((1, tn), lambda i, j, k: (0, j)),
    ]
    operands = [a_p, b_p, bias_p]

    if residual is None:
        kernel = functools.partial(_gemm_kernel, activation=activation)
    else:
        r_p = residual.astype(jnp.bfloat16)
        if (Mp, Np) != r_p.shape:
            r_p = jnp.pad(r_p, ((0, Mp - M), (0, Np - n_out)))
        in_specs.append(pl.BlockSpec((tm, tn), lambda i, j, k: (i, j)))
        operands.append(r_p)
        kernel = _gemm_res_kernel

    out = pl.pallas_call(
        kernel,
        out_shape=jax.ShapeDtypeStruct((Mp, Np), out_dtype),
        grid_spec=pltpu.PrefetchScalarGridSpec(
            num_scalar_prefetch=0,
            grid=grid,
            in_specs=in_specs,
            out_specs=pl.BlockSpec((tm, tn), lambda i, j, k: (i, j)),
            scratch_shapes=[pltpu.VMEM((tm, tn), jnp.float32)],
        ),
        compiler_params=pltpu.CompilerParams(
            dimension_semantics=("parallel", "parallel", "arbitrary")
        ),
    )(*operands)

    if (Mp, Np) != (M, n_out):
        out = out[:M, :n_out]
    return out


@jax.jit
def maxpool_reduce(patches):
    """patches: (KW, M, C) -> elementwise max over the window axis -> (M, C).

    Reshaped to a lane-dense (KW, rows, 128) layout so the output store is an
    unmasked 128-wide vst.
    """
    KW, M, C = patches.shape
    L = M * C
    rows0 = _round_up(L, 128) // 128
    tr = min(512, _round_up(rows0, 8))
    Lp = _round_up(L, 128 * tr)
    flat = patches.reshape(KW, L)
    if Lp != L:
        flat = jnp.pad(flat, ((0, 0), (0, Lp - L)), constant_values=-jnp.inf)
    R = Lp // 128
    out = pl.pallas_call(
        _maxpool_kernel,
        out_shape=jax.ShapeDtypeStruct((R, 128), patches.dtype),
        grid=(R // tr,),
        in_specs=[pl.BlockSpec((KW, tr, 128), lambda i: (0, i, 0))],
        out_specs=pl.BlockSpec((tr, 128), lambda i: (i, 0)),
        compiler_params=pltpu.CompilerParams(dimension_semantics=("parallel",)),
    )(flat.reshape(KW, R, 128))
    return out.reshape(-1)[:L].reshape(M, C)


@functools.partial(jax.jit, static_argnames=("n_out",))
def avgpool_fc_sigmoid(x, w_p, bias_p, *, n_out):
    """x: (N, HW, C) bf16 -> sigmoid(mean_HW(x) @ W + b) : (N, n_out) f32."""
    N, HW, C = x.shape
    Kp, Np = w_p.shape
    assert Kp == C and C % 128 == 0 and Np == _round_up(n_out, 128)
    out = pl.pallas_call(
        _head_kernel,
        out_shape=jax.ShapeDtypeStruct((N, Np), jnp.float32),
        grid=(1,),
        in_specs=[
            pl.BlockSpec((N, HW, C), lambda i: (0, 0, 0)),
            pl.BlockSpec((Kp, Np), lambda i: (0, 0)),
            pl.BlockSpec((1, Np), lambda i: (0, 0)),
        ],
        out_specs=pl.BlockSpec((N, Np), lambda i: (0, 0)),
        compiler_params=pltpu.CompilerParams(dimension_semantics=("arbitrary",)),
    )(x, w_p, bias_p)
    return out[:, :n_out]


# ----------------------------------------------------------------------------
# Conv / pool glue (plain JAX: im2col + call Pallas GEMM)
# ----------------------------------------------------------------------------

def conv_bn(x, prep, *, stride, padding, relu, residual=None):
    """x: NHWC bf16. prep: pre-folded GEMM-ready weights. Optional fused residual."""
    kh, kw, cin, cout = prep["kh"], prep["kw"], prep["cin"], prep["cout"]
    N, H, W, C = x.shape
    assert C == cin

    if kh == 1 and kw == 1:
        if stride > 1:
            x = x[:, ::stride, ::stride, :]
        Ho, Wo = x.shape[1], x.shape[2]
        A = x.reshape(N * Ho * Wo, C)
    else:
        Ho = (H + 2 * padding - kh) // stride + 1
        Wo = (W + 2 * padding - kw) // stride + 1
        xp = jnp.pad(x, ((0, 0), (padding, padding), (padding, padding), (0, 0)))
        # TODO(synk): fold the kh*kw tap loop into the GEMM K-reduction via manual
        # windowed DMA from the padded NHWC map instead of materializing bf16 im2col.
        patches = [
            xp[:, dh: dh + stride * Ho: stride, dw: dw + stride * Wo: stride, :]
            for dh in range(kh) for dw in range(kw)
        ]
        A = jnp.stack(patches, axis=3).reshape(N * Ho * Wo, kh * kw * C)  # (dh,dw,c) order

    if residual is not None:
        res = residual.reshape(N * Ho * Wo, cout)
        out = gemm_bias_act(A, prep["w"], prep["b"], residual=res,
                            n_out=cout, activation="relu", out_dtype=jnp.bfloat16)
    else:
        act = "relu" if relu else "none"
        out = gemm_bias_act(A, prep["w"], prep["b"],
                            n_out=cout, activation=act, out_dtype=jnp.bfloat16)
    return out.reshape(N, Ho, Wo, cout)


def maxpool2d_3x3_s2_p1(x):
    """PyTorch MaxPool2d(kernel_size=3, stride=2, padding=1), NHWC bf16."""
    N, H, W, C = x.shape
    Ho = (H + 2 - 3) // 2 + 1
    Wo = (W + 2 - 3) // 2 + 1
    xp = jnp.pad(x, ((0, 0), (1, 1), (1, 1), (0, 0)), constant_values=-jnp.inf)
    patches = jnp.stack(
        [xp[:, dh: dh + 2 * Ho: 2, dw: dw + 2 * Wo: 2, :]
         for dh in range(3) for dw in range(3)],
        axis=0,
    ).reshape(9, N * Ho * Wo, C)
    out = maxpool_reduce(patches)
    return out.reshape(N, Ho, Wo, C)


def bottleneck(x, p, stride):
    out = conv_bn(x, p["conv1"], stride=1, padding=0, relu=True)
    out = conv_bn(out, p["conv2"], stride=stride, padding=1, relu=True)
    if "down" in p:
        identity = conv_bn(x, p["down"], stride=stride, padding=0, relu=False)
    else:
        identity = x
    # conv3 + folded BN + residual add + ReLU fused into a single GEMM epilogue.
    return conv_bn(out, p["conv3"], stride=1, padding=0, relu=True, residual=identity)


# ----------------------------------------------------------------------------
# Parameter construction (ResNet-101: blocks [3, 4, 23, 3]) + GEMM-ready prep
# ----------------------------------------------------------------------------
# TODO(synk): the original module loads torchvision ImageNet-pretrained weights;
# no file/network access here, so shapes-identical deterministic random params are used.

class _ParamGen:
    def __init__(self, key):
        self._key = key

    def _next(self):
        self._key, k = jax.random.split(self._key)
        return k

    def conv(self, cout, cin, kh, kw):
        fan_in = cin * kh * kw
        return jax.random.normal(self._next(), (cout, cin, kh, kw), jnp.float32) * math.sqrt(
            2.0 / fan_in
        )

    def bn(self, c):
        gamma = jax.random.uniform(self._next(), (c,), jnp.float32, 0.5, 1.5)
        beta = jax.random.normal(self._next(), (c,), jnp.float32) * 0.1
        mean = jax.random.normal(self._next(), (c,), jnp.float32) * 0.1
        var = jax.random.uniform(self._next(), (c,), jnp.float32, 0.5, 1.5)
        return (gamma, beta, mean, var)

    def linear(self, in_f, out_f):
        w = jax.random.normal(self._next(), (out_f, in_f), jnp.float32) * math.sqrt(1.0 / in_f)
        b = jax.random.normal(self._next(), (out_f,), jnp.float32) * 0.01
        return (w, b)


def build_resnet101_params(key):
    g = _ParamGen(key)
    params = {"conv1_w": g.conv(64, 6, 7, 7), "bn1": g.bn(64)}
    inplanes, expansion = 64, 4
    layers = []
    for planes, nblocks, layer_stride in [(64, 3, 1), (128, 4, 2), (256, 23, 2), (512, 3, 2)]:
        blocks = []
        for bi in range(nblocks):
            s = layer_stride if bi == 0 else 1
            width = planes
            p = {
                "conv1_w": g.conv(width, inplanes, 1, 1), "bn1": g.bn(width),
                "conv2_w": g.conv(width, width, 3, 3), "bn2": g.bn(width),
                "conv3_w": g.conv(planes * expansion, width, 1, 1), "bn3": g.bn(planes * expansion),
            }
            if s != 1 or inplanes != planes * expansion:
                p["down_w"] = g.conv(planes * expansion, inplanes, 1, 1)
                p["down_bn"] = g.bn(planes * expansion)
            blocks.append((p, s))
            inplanes = planes * expansion
        layers.append(blocks)
    params["layers"] = layers
    params["fc"] = g.linear(2048, 4)
    return params


def _prepare_gemm(w_mat, scale, bias):
    """Fold per-column scale into W, pad to 128-aligned (Kp, Np), cast W to bf16."""
    K, N = w_mat.shape
    Kp, Np = _round_up(K, 128), _round_up(N, 128)
    w_f = w_mat.astype(jnp.float32) * scale[None, :]
    w_p = jnp.pad(w_f, ((0, Kp - K), (0, Np - N))).astype(jnp.bfloat16)
    b_p = jnp.pad(bias.reshape(1, N).astype(jnp.float32), ((0, 0), (0, Np - N)))
    return w_p, b_p


def _prepare_conv(w, bn):
    Cout, Cin, kh, kw = w.shape
    gamma, beta, mean, var = bn
    scale = gamma / jnp.sqrt(var + _BN_EPS)
    bias = beta - mean * scale
    if kh == 1 and kw == 1:
        w_mat = w.reshape(Cout, Cin).T                                        # (Cin, Cout)
    else:
        w_mat = jnp.transpose(w, (2, 3, 1, 0)).reshape(kh * kw * Cin, Cout)   # (dh,dw,c) rows
    w_p, b_p = _prepare_gemm(w_mat, scale, bias)
    return {"w": w_p, "b": b_p, "kh": kh, "kw": kw, "cin": Cin, "cout": Cout}


def prepare_resnet101_params(raw):
    """One-time: fold BN, transpose to GEMM layout, pad, cast weights to bf16."""
    params = {"conv1": _prepare_conv(raw["conv1_w"], raw["bn1"])}
    layers = []
    for blocks in raw["layers"]:
        prepped = []
        for p, s in blocks:
            q = {
                "conv1": _prepare_conv(p["conv1_w"], p["bn1"]),
                "conv2": _prepare_conv(p["conv2_w"], p["bn2"]),
                "conv3": _prepare_conv(p["conv3_w"], p["bn3"]),
            }
            if "down_w" in p:
                q["down"] = _prepare_conv(p["down_w"], p["down_bn"])
            prepped.append((q, s))
        layers.append(prepped)
    params["layers"] = layers
    fc_w, fc_b = raw["fc"]
    w_p, b_p = _prepare_gemm(fc_w.T, jnp.ones((fc_w.shape[0],), jnp.float32), fc_b)
    params["fc"] = {"w": w_p, "b": b_p, "cout": fc_w.shape[0]}
    return params


# ----------------------------------------------------------------------------
# Forward pass (torchvision resnet101 with 6-ch conv1, 4-way fc, sigmoid)
# ----------------------------------------------------------------------------

def resnet101_forward(x_nchw, params):
    # NCHW f32 (PyTorch) -> NHWC bf16 internally
    x = jnp.transpose(x_nchw, (0, 2, 3, 1)).astype(jnp.bfloat16)

    # stem: conv 7x7/s2 + BN + ReLU, maxpool 3x3/s2
    x = conv_bn(x, params["conv1"], stride=2, padding=3, relu=True)
    x = maxpool2d_3x3_s2_p1(x)

    # layer1..layer4
    for blocks in params["layers"]:
        for p, s in blocks:
            x = bottleneck(x, p, s)

    # fused adaptive avg pool (1,1) + fc (2048 -> 4) + sigmoid; f32 output
    N, H, W, C = x.shape
    fc = params["fc"]
    out = avgpool_fc_sigmoid(x.reshape(N, H * W, C), fc["w"], fc["b"], n_out=fc["cout"])
    return out  # (N, 4), float32, values in [0, 1]


# ----------------------------------------------------------------------------
# Main
# ----------------------------------------------------------------------------

if __name__ == "__main__":
    key = jax.random.PRNGKey(0)
    k_params, k_input = jax.random.split(key)

    params = prepare_resnet101_params(build_resnet101_params(k_params))

    # small deterministic input: batch=2, 6 channels (qa4camera stacks two RGB images),
    # 64x64 spatial -> final feature map 2x2x2048 before global average pool.
    x = jax.random.normal(k_input, (2, 6, 64, 64), jnp.float32)

    # One executable for the whole network: all Pallas GEMM launches + glue ops are
    # compiled/fused together (params are captured as constants, static ints stay static).
    forward = jax.jit(lambda inp: resnet101_forward(inp, params))

    y = forward(x)
    y = jax.block_until_ready(y)

    assert y.shape == (2, 4), y.shape
    assert y.dtype == jnp.float32
    assert bool(jnp.all(jnp.isfinite(y)))
    # sigmoid can legitimately saturate to exactly 0.0 / 1.0 in f32 -> closed interval
    assert bool(jnp.all((y >= 0.0) & (y <= 1.0)))

    print("KERNEL_OK")
</pallas_src>

<mosaic_0001>
module attributes {stable_mosaic.version = 11 : i64} {
  func.func @_gemm_kernel(%arg0: i32, %arg1: i32, %arg2: i32, %arg3: memref<512x384xbf16, #tpu.memory_space<vmem>>, %arg4: memref<384x128xbf16, #tpu.memory_space<vmem>>, %arg5: memref<1x128xf32, #tpu.memory_space<vmem>>, %arg6: memref<512x128xbf16, #tpu.memory_space<vmem>>, %arg7: memref<512x128xf32, #tpu.memory_space<vmem>>) attributes {dimension_semantics = [#tpu.dimension_semantics<parallel>, #tpu.dimension_semantics<parallel>, #tpu.dimension_semantics<arbitrary>], iteration_bounds = array<i64: 4, 1, 1>, scalar_prefetch = 0 : i64, scratch_operands = 1 : i64, tpu.core_type = #tpu.core_type<tc>, window_params = [{transform_indices = @transform_0, window_bounds = array<i64: 512, 384>}, {transform_indices = @transform_1, window_bounds = array<i64: 384, 128>}, {transform_indices = @transform_2, window_bounds = array<i64: 1, 128>}, {transform_indices = @transform_3, window_bounds = array<i64: 512, 128>}]} {
    %c0_i32 = arith.constant 0 : i32
    %0 = arith.cmpi eq, %arg2, %c0_i32 : i32
    %1 = arith.extui %0 : i1 to i32
    %c0_i32_0 = arith.constant 0 : i32
    %2 = arith.cmpi ne, %1, %c0_i32_0 : i32
    scf.if %2 {
      %cst_10 = arith.constant 0.000000e+00 : f32
      %12 = vector.broadcast %cst_10 : f32 to vector<512x128xf32>
      %c0_11 = arith.constant 0 : index
      %c0_12 = arith.constant 0 : index
      %13 = vector.load %arg7[%c0_11, %c0_12] : memref<512x128xf32, #tpu.memory_space<vmem>>, vector<512x128xf32>
      tpu.vector_store %arg7[%c0_11, %c0_12], %12 {strides = array<i32>} : memref<512x128xf32, #tpu.memory_space<vmem>>, vector<512x128xf32>,
    } else {
    }
    %c0 = arith.constant 0 : index
    %c0_1 = arith.constant 0 : index
    %3 = vector.load %arg7[%c0, %c0_1] : memref<512x128xf32, #tpu.memory_space<vmem>>, vector<512x128xf32>
    %c0_2 = arith.constant 0 : index
    %c0_3 = arith.constant 0 : index
    %4 = vector.load %arg3[%c0_2, %c0_3] : memref<512x384xbf16, #tpu.memory_space<vmem>>, vector<512x384xbf16>
    %c0_4 = arith.constant 0 : index
    %c0_5 = arith.constant 0 : index
    %5 = vector.load %arg4[%c0_4, %c0_5] : memref<384x128xbf16, #tpu.memory_space<vmem>>, vector<384x128xbf16>
    %cst = arith.constant dense<0.000000e+00> : vector<512x128xf32>
    %6 = tpu.matmul %4, %5, %cst {dimension_numbers = #tpu.dot_dimension_numbers<[1], [0], [0], [1], [0, 0, 1, 1], [], []>} : vector<512x384xbf16>, vector<384x128xbf16>, vector<512x128xf32> -> vector<512x128xf32>
    %7 = arith.addf %3, %6 : vector<512x128xf32>
    %c0_6 = arith.constant 0 : index
    %c0_7 = arith.constant 0 : index
    %8 = vector.load %arg7[%c0_6, %c0_7] : memref<512x128xf32, #tpu.memory_space<vmem>>, vector<512x128xf32>
    tpu.vector_store %arg7[%c0_6, %c0_7], %7 {strides = array<i32>} : memref<512x128xf32, #tpu.memory_space<vmem>>, vector<512x128xf32>,
    %c0_i32_8 = arith.constant 0 : i32
    %9 = arith.cmpi eq, %arg2, %c0_i32_8 : i32
    %10 = arith.extui %9 : i1 to i32
    %c0_i32_9 = arith.constant 0 : i32
    %11 = arith.cmpi ne, %10, %c0_i32_9 : i32
    scf.if %11 {
      %c0_10 = arith.constant 0 : index
      %c0_11 = arith.constant 0 : index
      %12 = vector.load %arg7[%c0_10, %c0_11] : memref<512x128xf32, #tpu.memory_space<vmem>>, vector<512x128xf32>
      %c0_12 = arith.constant 0 : index
      %c0_13 = arith.constant 0 : index
      %13 = vector.load %arg5[%c0_12, %c0_13] : memref<1x128xf32, #tpu.memory_space<vmem>>, vector<1x128xf32>
      %14 = vector.broadcast %13 : vector<1x128xf32> to vector<512x128xf32>
      %15 = arith.addf %12, %14 : vector<512x128xf32>
      %cst_14 = arith.constant 0.000000e+00 : f32
      %16 = vector.broadcast %cst_14 : f32 to vector<512x128xf32>
      %17 = arith.maximumf %15, %16 : vector<512x128xf32>
      %18 = arith.truncf %17 : vector<512x128xf32> to vector<512x128xbf16>
      %c0_15 = arith.constant 0 : index
      %c0_16 = arith.constant 0 : index
      %19 = vector.load %arg6[%c0_15, %c0_16] : memref<512x128xbf16, #tpu.memory_space<vmem>>, vector<512x128xbf16>
      tpu.vector_store %arg6[%c0_15, %c0_16], %18 {strides = array<i32>} : memref<512x128xbf16, #tpu.memory_space<vmem>>, vector<512x128xbf16>,
    } else {
    }
    return
  }
  func.func @transform_0(%arg0: i32, %arg1: i32, %arg2: i32) -> (i32, i32) {
    %c0_i32 = arith.constant 0 : i32
    return %arg0, %arg2 : i32, i32
  }
  func.func @transform_1(%arg0: i32, %arg1: i32, %arg2: i32) -> (i32, i32) {
    %c0_i32 = arith.constant 0 : i32
    return %arg2, %arg1 : i32, i32
  }
  func.func @transform_2(%arg0: i32, %arg1: i32, %arg2: i32) -> (i32, i32) {
    %c0_i32 = arith.constant 0 : i32
    %c0_i32_0 = arith.constant 0 : i32
    return %c0_i32, %arg1 : i32, i32
  }
  func.func @transform_3(%arg0: i32, %arg1: i32, %arg2: i32) -> (i32, i32) {
    %c0_i32 = arith.constant 0 : i32
    return %arg0, %arg1 : i32, i32
  }
}

</mosaic_0001>

<bundles_post_ra>
// kernel: gemm_bias_act.1
= control target key start
LH: loop header
LB: loop body
LE: loop exit
PB: predicated region body
PF: predicated region fallthrough
CT: control target
= control target key end

     0   :  { %s3402_s12 = smov 0   ;;  %s3404_s13 = smov 0   ;;  %s3864_s0 = inlined_call_operand.vmem [shape: bf16[2048,384], index: 0, kind: input, shape index: {}]   ;;  %s3865_s1 = inlined_call_operand.vmem [shape: bf16[384,128], index: 1, kind: input, shape index: {}]   ;;  %s3866_s2 = inlined_call_operand.vmem [shape: f32[1,128], index: 2, kind: input, shape index: {}]   ;;  %s3867_s3 = inlined_call_operand.vmem [shape: bf16[2048,128], index: 3, kind: output, shape index: {}]  }
   0x1   :  { %s3406_s14 = smov 0  }
   0x2 LB: > { %s32_s15 = sadd.s32 1, %s3375_s13  ;;  %p2580_p0 = scmp.ge.s32.totalorder %s3379_s14, 1  ;;  %s3379_s14 = sphi %s3406_s14, %s13_s14   ;;  %s3375_s13 = sphi %s3404_s13, %s3869_s13   ;;  %s3371_s12 = sphi %s3402_s12, %s3868_s12  }
   0x3   : > { %p34_p1 = scmp.ge.s32.totalorder %s32_s15, 4  ;;  %p191_p2 = scmp.lt.s32.totalorder %s3379_s14, 5 }
   0x5   : > { %s3871_s15 = smov (%p34_p1, %s32_s15), 0  ;;  %p192_p3 = pnand %p2580_p0, %p191_p2 }
   0x6   : > { %s2581_s18 = sshll.u32 (!%p192_p3), %s3371_s12, 6 }
   0x7   : > { %195 = sbr.rel (%p192_p3) target bundleno = 469 (0x1d5), region = 32  ;;  %p236_p4 = scmp.lt.s32.totalorder (!%p192_p3), %s2581_s18, 255 }
   0xc   : > { %v3205_v0 = vld [vmem:[%s3865_s1 + $0x38] sm:$0xff]   ;;  %v3381_v1 = vmov 0   ;;  %v3206_v2 = vld [vmem:[%s3865_s1 + $0x30] sm:$0xff]   ;;  %v3207_v3 = vld [vmem:[%s3865_s1 + $0x28] sm:$0xff]   ;;  %s3873_s18 = smov (!%p236_p4, %s2581_s18), 255 }
   0xd   : > { %1232 = vmatprep.subr.bf16.mxu0 %v3381_v1  ;;  %3147 = vmatprep.subr.bf16.mxu1 %v3381_v1  ;;  %v3208_v4 = vld [vmem:[%s3865_s1 + $0x20] sm:$0xff]   ;;  %s3179_s25 = smul.u32 12, %s3873_s18  ;;  %v3209_v5 = vld [vmem:[%s3865_s1 + $0x18] sm:$0xff]   ;;  %v3210_v7 = vld [vmem:[%s3865_s1 + $0x10] sm:$0xff]  }
   0xe   : > { %1233 = vmatpush1.bf16.msra.mxu0 %v3205_v0  ;;  %3163 = vmatpush1.bf16.msra.mxu1 %v3205_v0  ;;  %v3211_v9 = vld [vmem:[%s3865_s1 + $0x8] sm:$0xff]   ;;  %v3212_v10 = vld [vmem:[%s3865_s1] sm:$0xff]   ;;  %v3213_v11 = vld [vmem:[%s3865_s1 + $0x78] sm:$0xff]  }
   0xf   : > { %1234 = vmatprep.subr.bf16.mxu0 %v3381_v1  ;;  %3148 = vmatprep.subr.bf16.mxu1 %v3381_v1  ;;  %s3449_s30 = scalar_lea.vmem %s3864_s0, %s3179_s25  ;;  %v3214_v12 = vld [vmem:[%s3865_s1 + $0x70] sm:$0xff]   ;;  %v3215_v13 = vld [vmem:[%s3865_s1 + $0x68] sm:$0xff]   ;;  %v3216_v14 = vld [vmem:[%s3865_s1 + $0x60] sm:$0xff]   ;;  %s2584_s25 = sshll.u32 %s3873_s18, 2 }
  0x10   : > { %v3223_v6 = vld [vmem:[%s3449_s30 + $0x4] ss:$12 sps:$4 sm:$0xff]   ;;  %v3217_v15 = vld [vmem:[%s3865_s1 + $0x58] sm:$0xff]   ;;  %v3219_v17 = vld [vmem:[%s3865_s1 + $0x48] sm:$0xff]   ;;  %s3707_s28 = scalar_lea.vmem %s3867_s3, %s2584_s25 }
  0x11   : > { %v3226_v8 = vld [vmem:[%s3449_s30 + $0x244] ss:$12 sps:$4 sm:$0xff]   ;;  %1264 = vmatprep.mubr.bf16.mxu0 %v3223_v6  ;;  %v3227_v19 = vld [vmem:[%s3865_s1 + $0xb8] sm:$0xff]   ;;  %v3221_v20 = vld [vmem:[%s3449_s30] ss:$12 sps:$4 sm:$0xff]  }
  0x12   : > { %1235 = vmatpush1.bf16.msra.mxu0 %v3206_v2  ;;  %3164 = vmatpush1.bf16.msra.mxu1 %v3206_v2  ;;  %v3218_v16 = vld [vmem:[%s3865_s1 + $0x50] sm:$0xff]   ;;  %v3220_v18 = vld [vmem:[%s3865_s1 + $0x40] sm:$0xff]   ;;  %v3228_v22 = vld [vmem:[%s3449_s30 + $0x1c] ss:$12 sps:$4 sm:$0xff]  }
  0x13   : > { %1236 = vmatprep.subr.bf16.mxu0 %v3381_v1  ;;  %3149 = vmatprep.subr.bf16.mxu1 %v3381_v1  ;;  %v3224_v21 = vld [vmem:[%s3449_s30 + $0x240] ss:$12 sps:$4 sm:$0xff]   ;;  %v3230_v23 = vld [vmem:[%s3449_s30 + $0x25c] ss:$12 sps:$4 sm:$0xff]   ;;  %v3234_v24 = vld [vmem:[%s3865_s1 + $0xb0] sm:$0xff]  }
  0x14   : > { %1456 = vmatprep.mubr.bf16.mxu1 %v3226_v8  ;;  %v3241_v25 = vld [vmem:[%s3865_s1 + $0xa8] sm:$0xff]   ;;  %v3232_v26 = vld [vmem:[%s3449_s30 + $0x18] ss:$12 sps:$4 sm:$0xff]   ;;  %v3235_v28 = vld [vmem:[%s3449_s30 + $0x34] ss:$12 sps:$4 sm:$0xff]  }
  0x15   : > { %v3233_v27 = vld [vmem:[%s3449_s30 + $0x258] ss:$12 sps:$4 sm:$0xff]   ;;  %v3237_v29 = vld [vmem:[%s3449_s30 + $0x274] ss:$12 sps:$4 sm:$0xff]   ;;  %v3239_v31 = vld [vmem:[%s3449_s30 + $0x30] ss:$12 sps:$4 sm:$0xff]  }
  0x16   : > { %1237 = vmatpush1.bf16.msra.mxu0 %v3207_v3  ;;  %3165 = vmatpush1.bf16.msra.mxu1 %v3207_v3  ;;  %v3248_v30 = vld [vmem:[%s3865_s1 + $0xa0] sm:$0xff]   ;;  %v3255_v32 = vld [vmem:[%s3865_s1 + $0x98] sm:$0xff]   ;;  %v3262_v36 = vld [vmem:[%s3865_s1 + $0x90] sm:$0xff]  }
  0x17   : > { %1238 = vmatprep.subr.bf16.mxu0 %v3381_v1  ;;  %3150 = vmatprep.subr.bf16.mxu1 %v3381_v1  ;;  %v3240_v33 = vld [vmem:[%s3449_s30 + $0x270] ss:$12 sps:$4 sm:$0xff]   ;;  %v3242_v34 = vld [vmem:[%s3449_s30 + $0x4c] ss:$12 sps:$4 sm:$0xff]   ;;  %v3246_v37 = vld [vmem:[%s3449_s30 + $0x48] ss:$12 sps:$4 sm:$0xff]  }
  0x18   : > { %v3244_v35 = vld [vmem:[%s3449_s30 + $0x28c] ss:$12 sps:$4 sm:$0xff]   ;;  %v3247_v38 = vld [vmem:[%s3449_s30 + $0x288] ss:$12 sps:$4 sm:$0xff]   ;;  %v3249_v39 = vld [vmem:[%s3449_s30 + $0x64] ss:$12 sps:$4 sm:$0xff]  }
  0x19   : > { %v3251_v40 = vld [vmem:[%s3449_s30 + $0x2a4] ss:$12 sps:$4 sm:$0xff]   ;;  %v3269_v41 = vld [vmem:[%s3865_s1 + $0x88] sm:$0xff]   ;;  %v3263_v49 = vld [vmem:[%s3449_s30 + $0x94] ss:$12 sps:$4 sm:$0xff]  }
  0x1a   : > { %1239 = vmatpush1.bf16.msra.mxu0 %v3208_v4  ;;  %3166 = vmatpush1.bf16.msra.mxu1 %v3208_v4  ;;  %v3276_v42 = vld [vmem:[%s3865_s1 + $0x80] sm:$0xff]   ;;  %v3256_v45 = vld [vmem:[%s3449_s30 + $0x7c] ss:$12 sps:$4 sm:$0xff]   ;;  %v3270_v53 = vld [vmem:[%s3449_s30 + $0xac] ss:$12 sps:$4 sm:$0xff]  }
  0x1b   : > { %1240 = vmatprep.subr.bf16.mxu0 %v3381_v1  ;;  %3151 = vmatprep.subr.bf16.mxu1 %v3381_v1  ;;  %v3253_v43 = vld [vmem:[%s3449_s30 + $0x60] ss:$12 sps:$4 sm:$0xff]   ;;  %v3258_v46 = vld [vmem:[%s3449_s30 + $0x2bc] ss:$12 sps:$4 sm:$0xff]   ;;  %v3260_v47 = vld [vmem:[%s3449_s30 + $0x78] ss:$12 sps:$4 sm:$0xff]  }
  0x1c   : > { %v3254_v44 = vld [vmem:[%s3449_s30 + $0x2a0] ss:$12 sps:$4 sm:$0xff]   ;;  %v3261_v48 = vld [vmem:[%s3449_s30 + $0x2b8] ss:$12 sps:$4 sm:$0xff]   ;;  %v3267_v51 = vld [vmem:[%s3449_s30 + $0x90] ss:$12 sps:$4 sm:$0xff]  }
  0x1d   : > { %v3265_v50 = vld [vmem:[%s3449_s30 + $0x2d4] ss:$12 sps:$4 sm:$0xff]   ;;  %v3268_v52 = vld [vmem:[%s3449_s30 + $0x2d0] ss:$12 sps:$4 sm:$0xff]   ;;  %v3272_v54 = vld [vmem:[%s3449_s30 + $0x2ec] ss:$12 sps:$4 sm:$0xff]  }
  0x1e   : > { %1241 = vmatpush1.bf16.msra.mxu0 %v3209_v5  ;;  %3167 = vmatpush1.bf16.msra.mxu1 %v3209_v5  ;;  %v3274_v55 = vld [vmem:[%s3449_s30 + $0xa8] ss:$12 sps:$4 sm:$0xff]   ;;  %v3277_v57 = vld [vmem:[%s3449_s30 + $0xc4] ss:$12 sps:$4 sm:$0xff]   ;;  %v3280_v59 = vld [vmem:[%s3449_s30 + $0xc0] ss:$12 sps:$4 sm:$0xff]  }
  0x1f   : > { %1242 = vmatprep.subr.bf16.mxu0 %v3381_v1  ;;  %3152 = vmatprep.subr.bf16.mxu1 %v3381_v1  ;;  %v3275_v56 = vld [vmem:[%s3449_s30 + $0x2e8] ss:$12 sps:$4 sm:$0xff]   ;;  %v3281_v60 = vld [vmem:[%s3449_s30 + $0x20] ss:$12 sps:$4 sm:$0xff]   ;;  %v3284_v62 = vld [vmem:[%s3449_s30 + $0x38] ss:$12 sps:$4 sm:$0xff]  }
  0x20   : > { %v3279_v58 = vld [vmem:[%s3449_s30 + $0x8] ss:$12 sps:$4 sm:$0xff]   ;;  %v3285_v63 = vld [vmem:[%s3449_s30 + $0xd8] ss:$12 sps:$4 sm:$0xff]   ;;  %v3286_v0 = vld [vmem:[%s3449_s30 + $0x50] ss:$12 sps:$4 sm:$0xff]  }
  0x21   : > { %v3282_v61 = vld [vmem:[%s3449_s30 + $0xdc] ss:$12 sps:$4 sm:$0xff]   ;;  %v3291_v4 = vld [vmem:[%s3449_s30 + $0x80] ss:$12 sps:$4 sm:$0xff]   ;;  %v3294_v6 = vld [vmem:[%s3449_s30 + $0x98] ss:$12 sps:$4 sm:$0xff]  }
  0x22   : > { %1243 = vmatpush1.bf16.msra.mxu0 %v3210_v7  ;;  %3168 = vmatpush1.bf16.msra.mxu1 %v3210_v7  ;;  %v3289_v2 = vld [vmem:[%s3449_s30 + $0x68] ss:$12 sps:$4 sm:$0xff]   ;;  %v3290_v3 = vld [vmem:[%s3449_s30 + $0xf0] ss:$12 sps:$4 sm:$0xff]   ;;  %v3292_v5 = vld [vmem:[%s3449_s30 + $0x10c] ss:$12 sps:$4 sm:$0xff]  }
  0x23   : > { %1244 = vmatprep.subr.bf16.mxu0 %v3381_v1  ;;  %3153 = vmatprep.subr.bf16.mxu1 %v3381_v1  ;;  %v3295_v7 = vld [vmem:[%s3449_s30 + $0x108] ss:$12 sps:$4 sm:$0xff]   ;;  %v3296_v8 = vld [vmem:[%s3449_s30 + $0xb0] ss:$12 sps:$4 sm:$0xff]  }
  0x26   : > { %1245 = vmatpush1.bf16.msra.mxu0 %v3211_v9  ;;  %3169 = vmatpush1.bf16.msra.mxu1 %v3211_v9  ;;  %v3297_v9 = vld [vmem:[%s3449_s30 + $0x124] ss:$12 sps:$4 sm:$0xff]  }
  0x27   : > { %1246 = vmatprep.subr.bf16.mxu0 %v3381_v1  ;;  %3154 = vmatprep.subr.bf16.mxu1 %v3381_v1 }
  0x2a   : > { %1247 = vmatpush1.bf16.msra.mxu0 %v3212_v10  ;;  %3170 = vmatpush1.bf16.msra.mxu1 %v3212_v10  ;;  %v3299_v10 = vld [vmem:[%s3449_s30 + $0xc8] ss:$12 sps:$4 sm:$0xff]  }
  0x2b   : > { %1248 = vmatprep.subr.bf16.mxu0 %v3381_v1  ;;  %3155 = vmatprep.subr.bf16.mxu1 %v3381_v1 }
  0x2e   : > { %1249 = vmatpush2.bf16.msra.mxu0 %v3213_v11  ;;  %3171 = vmatpush2.bf16.msra.mxu1 %v3213_v11  ;;  %v3300_v11 = vld [vmem:[%s3449_s30 + $0x120] ss:$12 sps:$4 sm:$0xff]  }
  0x2f   : > { %1250 = vmatprep.subr.bf16.mxu0 %v3381_v1  ;;  %3156 = vmatprep.subr.bf16.mxu1 %v3381_v1 }
  0x32   : > { %1251 = vmatpush2.bf16.msra.mxu0 %v3214_v12  ;;  %3172 = vmatpush2.bf16.msra.mxu1 %v3214_v12  ;;  %v3301_v12 = vld [vmem:[%s3449_s30 + $0xe0] ss:$12 sps:$4 sm:$0xff]  }
  0x33   : > { %1252 = vmatprep.subr.bf16.mxu0 %v3381_v1  ;;  %3157 = vmatprep.subr.bf16.mxu1 %v3381_v1 }
  0x36   : > { %1253 = vmatpush2.bf16.msra.mxu0 %v3215_v13  ;;  %3173 = vmatpush2.bf16.msra.mxu1 %v3215_v13  ;;  %v3302_v13 = vld [vmem:[%s3449_s30 + $0x13c] ss:$12 sps:$4 sm:$0xff]  }
  0x37   : > { %1254 = vmatprep.subr.bf16.mxu0 %v3381_v1  ;;  %3158 = vmatprep.subr.bf16.mxu1 %v3381_v1 }
  0x3a   : > { %1255 = vmatpush2.bf16.msra.mxu0 %v3216_v14  ;;  %3174 = vmatpush2.bf16.msra.mxu1 %v3216_v14  ;;  %v3304_v14 = vld [vmem:[%s3449_s30 + $0xf8] ss:$12 sps:$4 sm:$0xff]  }
  0x3b   : > { %1256 = vmatprep.subr.bf16.mxu0 %v3381_v1  ;;  %3159 = vmatprep.subr.bf16.mxu1 %v3381_v1 }
  0x3e   : > { %1257 = vmatpush2.bf16.msra.mxu0 %v3217_v15  ;;  %3175 = vmatpush2.bf16.msra.mxu1 %v3217_v15  ;;  %v3305_v15 = vld [vmem:[%s3449_s30 + $0x138] ss:$12 sps:$4 sm:$0xff]  }
  0x3f   : > { %1258 = vmatprep.subr.bf16.mxu0 %v3381_v1  ;;  %3160 = vmatprep.subr.bf16.mxu1 %v3381_v1 }
  0x42   : > { %1259 = vmatpush2.bf16.msra.mxu0 %v3218_v16  ;;  %3176 = vmatpush2.bf16.msra.mxu1 %v3218_v16  ;;  %v3306_v16 = vld [vmem:[%s3449_s30 + $0x110] ss:$12 sps:$4 sm:$0xff]  }
  0x43   : > { %1260 = vmatprep.subr.bf16.mxu0 %v3381_v1  ;;  %3161 = vmatprep.subr.bf16.mxu1 %v3381_v1 }
  0x46   : > { %1261 = vmatpush2.bf16.msra.mxu0 %v3219_v17  ;;  %3177 = vmatpush2.bf16.msra.mxu1 %v3219_v17  ;;  %v3307_v17 = vld [vmem:[%s3449_s30 + $0x154] ss:$12 sps:$4 sm:$0xff]  }
  0x47   : > { %1262 = vmatprep.subr.bf16.mxu0 %v3381_v1  ;;  %3162 = vmatprep.subr.bf16.mxu1 %v3381_v1  ;;  %v3287_v1 = vld [vmem:[%s3449_s30 + $0xf4] ss:$12 sps:$4 sm:$0xff]  }
  0x4a   : > { %1263 = vmatpush2.bf16.msra.mxu0 %v3220_v18  ;;  %3178 = vmatpush2.bf16.msra.mxu1 %v3220_v18  ;;  %v3309_v18 = vld [vmem:[%s3449_s30 + $0x128] ss:$12 sps:$4 sm:$0xff]  }
  0x4b   : > { %3067 = vmatprep.subr.bf16.mxu1 %v3227_v19 }
  0x4d   : > { %1265 = vmatmul.mubr.bf16.vlgmr.msra.gmra.mxu0 %v3221_v20  ;;  %1457 = vmatmul.mubr.bf16.vlgmr.msra.gmra.mxu1 %v3224_v21  ;;  %v3311_v20 = vld [vmem:[%s3449_s30 + $0x140] ss:$12 sps:$4 sm:$0xff]  }
  0x4e   : > { %3068 = vmatpush3.bf16.msra.mxu1 %v3227_v19  ;;  %1272 = vmatprep.mubr.bf16.mxu0 %v3228_v22  ;;  %v3310_v19 = vld [vmem:[%s3449_s30 + $0x150] ss:$12 sps:$4 sm:$0xff]   ;;  %v3312_v21 = vld [vmem:[%s3449_s30 + $0x16c] ss:$12 sps:$4 sm:$0xff]  }
  0x4f   : > { %1464 = vmatprep.mubr.bf16.mxu1 %v3230_v23  ;;  %3069 = vmatprep.subr.bf16.mxu1 %v3234_v24  ;;  %v3314_v22 = vld [vmem:[%s3449_s30 + $0x158] ss:$12 sps:$4 sm:$0xff]   ;;  %v3315_v23 = vld [vmem:[%s3449_s30 + $0x168] ss:$12 sps:$4 sm:$0xff]  }
  0x52   : > { %3070 = vmatpush3.bf16.msra.mxu1 %v3234_v24  ;;  %v3316_v24 = vld [vmem:[%s3449_s30 + $0x170] ss:$12 sps:$4 sm:$0xff]  }
  0x53   : > { %3071 = vmatprep.subr.bf16.mxu1 %v3241_v25 }
  0x55   : > { %1273 = vmatmul.mubr.bf16.gmra.mxu0 %v3232_v26  ;;  %1465 = vmatmul.mubr.bf16.gmra.mxu1 %v3233_v27  ;;  %v3319_v26 = vld [vmem:[%s3449_s30 + $0x188] ss:$12 sps:$4 sm:$0xff]   ;;  %v3320_v27 = vld [vmem:[%s3449_s30 + $0x180] ss:$12 sps:$4 sm:$0xff]  }
  0x56   : > { %1280 = vmatprep.mubr.bf16.mxu0 %v3235_v28  ;;  %1472 = vmatprep.mubr.bf16.mxu1 %v3237_v29  ;;  %v3321_v28 = vld [vmem:[%s3449_s30 + $0x1a0] ss:$12 sps:$4 sm:$0xff]   ;;  %v3322_v29 = vld [vmem:[%s3449_s30 + $0x19c] ss:$12 sps:$4 sm:$0xff]  }
  0x57   : > { %3072 = vmatpush3.bf16.msra.mxu1 %v3241_v25  ;;  %v3317_v25 = vld [vmem:[%s3449_s30 + $0x184] ss:$12 sps:$4 sm:$0xff]  }
  0x58   : > { %3073 = vmatprep.subr.bf16.mxu1 %v3248_v30 }
  0x5b   : > { %3074 = vmatpush3.bf16.msra.mxu1 %v3248_v30  ;;  %v3324_v30 = vld [vmem:[%s3449_s30 + $0x1b8] ss:$12 sps:$4 sm:$0xff]  }
  0x5c   : > { %3075 = vmatprep.subr.bf16.mxu1 %v3255_v32 }
  0x5d   : > { %1281 = vmatmul.mubr.bf16.gmra.mxu0 %v3239_v31  ;;  %1473 = vmatmul.mubr.bf16.gmra.mxu1 %v3240_v33  ;;  %v3325_v31 = vld [vmem:[%s3449_s30 + $0x198] ss:$12 sps:$4 sm:$0xff]   ;;  %v3327_v33 = vld [vmem:[%s3449_s30 + $0x1b4] ss:$12 sps:$4 sm:$0xff]  }
  0x5e   : > { %1288 = vmatprep.mubr.bf16.mxu0 %v3242_v34  ;;  %1480 = vmatprep.mubr.bf16.mxu1 %v3244_v35  ;;  %v3329_v34 = vld [vmem:[%s3449_s30 + $0x1e8] ss:$12 sps:$4 sm:$0xff]   ;;  %v3330_v35 = vld [vmem:[%s3449_s30 + $0x1b0] ss:$12 sps:$4 sm:$0xff]  }
  0x5f   : > { %3076 = vmatpush3.bf16.msra.mxu1 %v3255_v32  ;;  %v3326_v32 = vld [vmem:[%s3449_s30 + $0x1d0] ss:$12 sps:$4 sm:$0xff]  }
  0x60   : > { %3077 = vmatprep.subr.bf16.mxu1 %v3262_v36 }
  0x63   : > { %3078 = vmatpush3.bf16.msra.mxu1 %v3262_v36  ;;  %v3331_v36 = vld [vmem:[%s3449_s30 + $0x200] ss:$12 sps:$4 sm:$0xff]  }
  0x64   : > { %3079 = vmatprep.subr.bf16.mxu1 %v3269_v41 }
  0x65   : > { %1289 = vmatmul.mubr.bf16.gmra.mxu0 %v3246_v37  ;;  %1481 = vmatmul.mubr.bf16.gmra.mxu1 %v3247_v38  ;;  %v3332_v37 = vld [vmem:[%s3449_s30 + $0x1cc] ss:$12 sps:$4 sm:$0xff]  }
  0x66   : > { %1296 = vmatprep.mubr.bf16.mxu0 %v3249_v39  ;;  %1488 = vmatprep.mubr.bf16.mxu1 %v3251_v40  ;;  %v3334_v38 = vld [vmem:[%s3449_s30 + $0x218] ss:$12 sps:$4 sm:$0xff]   ;;  %v3335_v39 = vld [vmem:[%s3449_s30 + $0x1c8] ss:$12 sps:$4 sm:$0xff]   ;;  %v3336_v40 = vld [vmem:[%s3449_s30 + $0x230] ss:$12 sps:$4 sm:$0xff]  }
  0x67   : > { %3080 = vmatpush3.bf16.msra.mxu1 %v3269_v41  ;;  %v3337_v41 = vld [vmem:[%s3449_s30 + $0x1e4] ss:$12 sps:$4 sm:$0xff]  }
  0x68   : > { %3081 = vmatprep.subr.bf16.mxu1 %v3276_v42 }
  0x6b   : > { %3082 = vmatpush3.bf16.msra.mxu1 %v3276_v42  ;;  %v3339_v42 = vld [vmem:[%s3449_s30 + $0x248] ss:$12 sps:$4 sm:$0xff]  }
  0x6d   : > { %1297 = vmatmul.mubr.bf16.gmra.mxu0 %v3253_v43  ;;  %1489 = vmatmul.mubr.bf16.gmra.mxu1 %v3254_v44  ;;  %v3340_v43 = vld [vmem:[%s3449_s30 + $0x1e0] ss:$12 sps:$4 sm:$0xff]  }
  0x6e   : > { %1304 = vmatprep.mubr.bf16.mxu0 %v3256_v45  ;;  %1496 = vmatprep.mubr.bf16.mxu1 %v3258_v46  ;;  %v3341_v44 = vld [vmem:[%s3449_s30 + $0x260] ss:$12 sps:$4 sm:$0xff]   ;;  %v3342_v45 = vld [vmem:[%s3449_s30 + $0x1fc] ss:$12 sps:$4 sm:$0xff]   ;;  %v3344_v46 = vld [vmem:[%s3449_s30 + $0x278] ss:$12 sps:$4 sm:$0xff]  }
  0x75   : > { %1305 = vmatmul.mubr.bf16.gmra.mxu0 %v3260_v47  ;;  %1497 = vmatmul.mubr.bf16.gmra.mxu1 %v3261_v48  ;;  %v3345_v47 = vld [vmem:[%s3449_s30 + $0x1f8] ss:$12 sps:$4 sm:$0xff]   ;;  %v3346_v48 = vld [vmem:[%s3449_s30 + $0x290] ss:$12 sps:$4 sm:$0xff]  }
  0x76   : > { %1312 = vmatprep.mubr.bf16.mxu0 %v3263_v49  ;;  %1504 = vmatprep.mubr.bf16.mxu1 %v3265_v50  ;;  %v3347_v49 = vld [vmem:[%s3449_s30 + $0x214] ss:$12 sps:$4 sm:$0xff]  }
  0x77   : > { %v3349_v50 = vld [vmem:[%s3449_s30 + $0x2a8] ss:$12 sps:$4 sm:$0xff]  }
  0x7d   : > { %1313 = vmatmul.mubr.bf16.gmra.mxu0 %v3267_v51  ;;  %1505 = vmatmul.mubr.bf16.gmra.mxu1 %v3268_v52  ;;  %v3350_v51 = vld [vmem:[%s3449_s30 + $0x210] ss:$12 sps:$4 sm:$0xff]   ;;  %v3351_v52 = vld [vmem:[%s3449_s30 + $0x2c0] ss:$12 sps:$4 sm:$0xff]  }
  0x7e   : > { %1320 = vmatprep.mubr.bf16.mxu0 %v3270_v53  ;;  %1512 = vmatprep.mubr.bf16.mxu1 %v3272_v54  ;;  %v3352_v53 = vld [vmem:[%s3449_s30 + $0x22c] ss:$12 sps:$4 sm:$0xff]  }
  0x7f   : > { %v3354_v54 = vld [vmem:[%s3449_s30 + $0x2d8] ss:$12 sps:$4 sm:$0xff]  }
  0x85   : > { %1321 = vmatmul.mubr.bf16.gmra.mxu0 %v3274_v55  ;;  %1513 = vmatmul.mubr.bf16.gmra.mxu1 %v3275_v56  ;;  %v3355_v55 = vld [vmem:[%s3449_s30 + $0x228] ss:$12 sps:$4 sm:$0xff]   ;;  %v3356_v56 = vld [vmem:[%s3449_s30 + $0x2f0] ss:$12 sps:$4 sm:$0xff]  }
  0x86   : > { %1328 = vmatprep.mubr.bf16.mxu0 %v3277_v57  ;;  %3083 = vmatprep.mubr.bf16.mxu1 %v3279_v58 }
  0x8d   : > { %1329 = vmatmul.mubr.bf16.gmra.mxu0 %v3280_v59  ;;  %3084 = vmatmul.mubr.bf16.vlgmr.msra.gmra.mxu1 %v3281_v60 }
  0x8e   : > { %1336 = vmatprep.mubr.bf16.mxu0 %v3282_v61  ;;  %3087 = vmatprep.mubr.bf16.mxu1 %v3284_v62 }
  0x95   : > { %1337 = vmatmul.mubr.bf16.gmra.mxu0 %v3285_v63  ;;  %3088 = vmatmul.mubr.bf16.gmra.mxu1 %v3286_v0 }
  0x96   : > { %1344 = vmatprep.mubr.bf16.mxu0 %v3287_v1  ;;  %3091 = vmatprep.mubr.bf16.mxu1 %v3289_v2 }
  0x9d   : > { %1345 = vmatmul.mubr.bf16.gmra.mxu0 %v3290_v3  ;;  %3092 = vmatmul.mubr.bf16.gmra.mxu1 %v3291_v4 }
  0x9e   : > { %1352 = vmatprep.mubr.bf16.mxu0 %v3292_v5  ;;  %3095 = vmatprep.mubr.bf16.mxu1 %v3294_v6 }
  0xa5   : > { %1353 = vmatmul.mubr.bf16.gmra.mxu0 %v3295_v7  ;;  %3096 = vmatmul.mubr.bf16.gmra.mxu1 %v3296_v8 }
  0xa6   : > { %1360 = vmatprep.mubr.bf16.mxu0 %v3297_v9  ;;  %3099 = vmatprep.mubr.bf16.mxu1 %v3299_v10 }
  0xad   : > { %1361 = vmatmul.mubr.bf16.gmra.mxu0 %v3300_v11  ;;  %3100 = vmatmul.mubr.bf16.gmra.mxu1 %v3301_v12 }
  0xae   : > { %1368 = vmatprep.mubr.bf16.mxu0 %v3302_v13  ;;  %3103 = vmatprep.mubr.bf16.mxu1 %v3304_v14 }
  0xb5   : > { %1369 = vmatmul.mubr.bf16.gmra.mxu0 %v3305_v15  ;;  %3104 = vmatmul.mubr.bf16.gmra.mxu1 %v3306_v16 }
  0xb6   : > { %1376 = vmatprep.mubr.bf16.mxu0 %v3307_v17  ;;  %3107 = vmatprep.mubr.bf16.mxu1 %v3309_v18 }
  0xbd   : > { %1377 = vmatmul.mubr.bf16.gmra.mxu0 %v3310_v19  ;;  %3108 = vmatmul.mubr.bf16.gmra.mxu1 %v3311_v20 }
  0xbe   : > { %1384 = vmatprep.mubr.bf16.mxu0 %v3312_v21  ;;  %3111 = vmatprep.mubr.bf16.mxu1 %v3314_v22 }
  0xc5   : > { %1385 = vmatmul.mubr.bf16.gmra.mxu0 %v3315_v23  ;;  %3112 = vmatmul.mubr.bf16.gmra.mxu1 %v3316_v24 }
  0xc6   : > { %1392 = vmatprep.mubr.bf16.mxu0 %v3317_v25  ;;  %3115 = vmatprep.mubr.bf16.mxu1 %v3319_v26 }
  0xcd   : > { %1393 = vmatmul.mubr.bf16.gmra.mxu0 %v3320_v27  ;;  %3116 = vmatmul.mubr.bf16.gmra.mxu1 %v3321_v28 }
  0xce   : > { %1400 = vmatprep.mubr.bf16.mxu0 %v3322_v29  ;;  %3119 = vmatprep.mubr.bf16.mxu1 %v3324_v30 }
  0xd5   : > { %1401 = vmatmul.mubr.bf16.gmra.mxu0 %v3325_v31  ;;  %3120 = vmatmul.mubr.bf16.gmra.mxu1 %v3326_v32 }
  0xd6   : > { %1408 = vmatprep.mubr.bf16.mxu0 %v3327_v33  ;;  %3123 = vmatprep.mubr.bf16.mxu1 %v3329_v34 }
  0xdd   : > { %1409 = vmatmul.mubr.bf16.gmra.mxu0 %v3330_v35  ;;  %3124 = vmatmul.mubr.bf16.gmra.mxu1 %v3331_v36 }
  0xde   : > { %1416 = vmatprep.mubr.bf16.mxu0 %v3332_v37  ;;  %3127 = vmatprep.mubr.bf16.mxu1 %v3334_v38 }
  0xe5   : > { %1417 = vmatmul.mubr.bf16.gmra.mxu0 %v3335_v39  ;;  %3128 = vmatmul.mubr.bf16.gmra.mxu1 %v3336_v40 }
  0xe6   : > { %1424 = vmatprep.mubr.bf16.mxu0 %v3337_v41  ;;  %3131 = vmatprep.mubr.bf16.mxu1 %v3339_v42 }
  0xed   : > { %1425 = vmatmul.mubr.bf16.gmra.mxu0 %v3340_v43  ;;  %3132 = vmatmul.mubr.bf16.gmra.mxu1 %v3341_v44 }
  0xee   : > { %1432 = vmatprep.mubr.bf16.mxu0 %v3342_v45  ;;  %3135 = vmatprep.mubr.bf16.mxu1 %v3344_v46 }
  0xf5   : > { %1433 = vmatmul.mubr.bf16.gmra.mxu0 %v3345_v47  ;;  %3136 = vmatmul.mubr.bf16.gmra.mxu1 %v3346_v48 }
  0xf6   : > { %1440 = vmatprep.mubr.bf16.mxu0 %v3347_v49  ;;  %3139 = vmatprep.mubr.bf16.mxu1 %v3349_v50 }
  0xfd   : > { %1441 = vmatmul.mubr.bf16.gmra.mxu0 %v3350_v51  ;;  %3140 = vmatmul.mubr.bf16.gmra.mxu1 %v3351_v52 }
  0xfe   : > { %1448 = vmatprep.mubr.bf16.mxu0 %v3352_v53  ;;  %3143 = vmatprep.mubr.bf16.mxu1 %v3354_v54 }
 0x105   : > { %1449 = vmatmul.mubr.bf16.gmra.mxu0 %v3355_v55  ;;  %3144 = vmatmul.mubr.bf16.gmra.mxu1 %v3356_v56 }
 0x10d   : > { %v3628_v57 = vpop.f32.mrf.mxu0  ;;  %v3630_v58 = vpop.f32.mrf.mxu1 }
 0x10f   : > { %v1268_v59 = vpop.f32.mrf.mxu0  ;;  %v1460_v60 = vpop.f32.mrf.mxu1 }
 0x111   : > { %v3632_v61 = vpop.f32.mrf.mxu0  ;;  %v3634_v62 = vpop.f32.mrf.mxu1 }
 0x113   : > { %v1271_v63 = vpop.f32.mrf.mxu0  ;;  %v1463_v0 = vpop.f32.mrf.mxu1 }
 0x114   : > { %v3691_v0 = vld [vmem:[%s3866_s2] ss:$0 sm:$0xff] }
 0x115   : > { %v1274_v1 = vpop.f32.mrf.mxu0  ;;  %v3636_v2 = vpop.f32.mrf.mxu1 }
 0x117   : > { %v1276_v3 = vpop.f32.mrf.mxu0  ;;  %v1468_v4 = vpop.f32.mrf.mxu1 }
 0x119   : > { %v1277_v5 = vpop.f32.mrf.mxu0  ;;  %v3638_v6 = vpop.f32.mrf.mxu1 }
 0x11b   : > { %v1279_v7 = vpop.f32.mrf.mxu0  ;;  %v1471_v8 = vpop.f32.mrf.mxu1 }
 0x11d   : > { %v3640_v9 = vpop.f32.mrf.mxu0  ;;  %v3642_v10 = vpop.f32.mrf.mxu1 }
 0x11f   : > { %v1284_v11 = vpop.f32.mrf.mxu0  ;;  %v1476_v12 = vpop.f32.mrf.mxu1 }
 0x121   : > { %v3644_v13 = vpop.f32.mrf.mxu0  ;;  %v3646_v14 = vpop.f32.mrf.mxu1 }
 0x123   : > { %v1287_v15 = vpop.f32.mrf.mxu0  ;;  %v1479_v16 = vpop.f32.mrf.mxu1 }
 0x125   : > { %v1290_v17 = vpop.f32.mrf.mxu0  ;;  %v3648_v18 = vpop.f32.mrf.mxu1 }
 0x127   : > { %v1292_v19 = vpop.f32.mrf.mxu0  ;;  %v1484_v20 = vpop.f32.mrf.mxu1 }
 0x129   : > { %v3650_v21 = vpop.f32.mrf.mxu0  ;;  %v3652_v22 = vpop.f32.mrf.mxu1 }
 0x12b   : > { %v1295_v23 = vpop.f32.mrf.mxu0  ;;  %v1487_v24 = vpop.f32.mrf.mxu1 }
 0x12d   : > { %v3654_v25 = vpop.f32.mrf.mxu0  ;;  %v3656_v26 = vpop.f32.mrf.mxu1 }
 0x12f   : > { %v1300_v27 = vpop.f32.mrf.mxu0  ;;  %v1492_v28 = vpop.f32.mrf.mxu1 }
 0x131   : > { %v3658_v29 = vpop.f32.mrf.mxu0  ;;  %v3660_v30 = vpop.f32.mrf.mxu1 }
 0x133   : > { %v1303_v31 = vpop.f32.mrf.mxu0  ;;  %v1495_v32 = vpop.f32.mrf.mxu1 }
 0x135   : > { %v3662_v33 = vpop.f32.mrf.mxu0  ;;  %v3664_v34 = vpop.f32.mrf.mxu1 }
 0x137   : > { %v1308_v35 = vpop.f32.mrf.mxu0  ;;  %v1500_v36 = vpop.f32.mrf.mxu1 }
 0x139   : > { %v3666_v37 = vpop.f32.mrf.mxu0  ;;  %v3668_v38 = vpop.f32.mrf.mxu1 }
 0x13b   : > { %v1311_v39 = vpop.f32.mrf.mxu0  ;;  %v1503_v40 = vpop.f32.mrf.mxu1 }
 0x13d   : > { %v3670_v41 = vpop.f32.mrf.mxu0  ;;  %v3672_v42 = vpop.f32.mrf.mxu1 }
 0x13f   : > { %v1316_v43 = vpop.f32.mrf.mxu0  ;;  %v1508_v44 = vpop.f32.mrf.mxu1 }
 0x141   : > { %v3674_v45 = vpop.f32.mrf.mxu0  ;;  %v3676_v46 = vpop.f32.mrf.mxu1 }
 0x143   : > { %v1319_v47 = vpop.f32.mrf.mxu0  ;;  %v1511_v48 = vpop.f32.mrf.mxu1 }
 0x145   : > { %v3678_v49 = vpop.f32.mrf.mxu0  ;;  %v3680_v50 = vpop.f32.mrf.mxu1 }
 0x147   : > { %v1324_v51 = vpop.f32.mrf.mxu0  ;;  %v1516_v52 = vpop.f32.mrf.mxu1 }
 0x149   : > { %v3682_v53 = vpop.f32.mrf.mxu0  ;;  %v3684_v54 = vpop.f32.mrf.mxu1 }
 0x14b   : > { %v1327_v55 = vpop.f32.mrf.mxu0  ;;  %v1519_v56 = vpop.f32.mrf.mxu1 }
 0x14d   : > { %v3686_v59 = vpop.f32.mrf.mxu0  ;;  %v3085_v60 = vpop.f32.mrf.mxu1 }
 0x14e   : > { %v1564_v63 = vadd.f32 %v3085_v60, %v1274_v1 }
 0x14f   : > { %v1332_v3 = vpop.f32.mrf.mxu0  ;;  %v1555_v4 = vpop.f32.mrf.mxu1 }
 0x150   : > { %v1556_v7 = vadd.f32 %v1555_v4, %v3628_v57  ;;  %v2014_v12 = vadd.f32 %v3691_v0, %v1564_v63 }
 0x151   : > { %v3694_v8 = vpop.f32.mrf.mxu0  ;;  %v3086_v11 = vpop.f32.mrf.mxu1 }
 0x152   : > { %v1567_v15 = vadd.f32 %v3086_v11, %v1277_v5  ;;  %v2012_v20 = vadd.f32 %v3691_v0, %v1556_v7  ;;  %v2078_v28 = vmax.f32 %v2014_v12, 0.0 }
 0x153   : > { %v1335_v16 = vpop.f32.mrf.mxu0  ;;  %v1558_v19 = vpop.f32.mrf.mxu1 }
 0x154   : > { %v2015_v1 = vadd.f32 %v3691_v0, %v1567_v15  ;;  %v1559_v23 = vadd.f32 %v1558_v19, %v3632_v61  ;;  %v2076_v36 = vmax.f32 %v2012_v20, 0.0 }
 0x155   : > { %v3701_v24 = vpop.f32.mrf.mxu0  ;;  %v3089_v27 = vpop.f32.mrf.mxu1 }
 0x156   : > { %v2079_v57 = vmax.f32 %v2015_v1, 0.0  ;;  %v2013_v31 = vadd.f32 %v3691_v0, %v1559_v23  ;;  %v1580_v32 = vadd.f32 %v3089_v27, %v1290_v17 }
 0x157   : > { %v1340_v5 = vpop.f32.mrf.mxu0  ;;  %v1571_v35 = vpop.f32.mrf.mxu1 }
 0x158   : > { %v2844_v39 = vpack.c.bf16 %v2079_v57, %v2078_v28  ;;  %v2077_v61 = vmax.f32 %v2013_v31, 0.0  ;;  %v1572_v40 = vadd.f32 %v1571_v35, %v3640_v9  ;;  %v2018_v17 = vadd.f32 %v3691_v0, %v1580_v32 }
 0x159   : > { %v3710_v43 = vpop.f32.mrf.mxu0  ;;  %v3090_v44 = vpop.f32.mrf.mxu1 }
 0x15a   : > { %2996 = vst [vmem:[%s3707_s28 + $0x8] sm:$0xff] %v2844_v39   ;;  %v2839_v47 = vpack.c.bf16 %v2077_v61, %v2076_v36  ;;  %v1583_v48 = vadd.f32 %v3090_v44, %v3650_v21  ;;  %v2016_v55 = vadd.f32 %v3691_v0, %v1572_v40  ;;  %v2082_v3 = vmax.f32 %v2018_v17, 0.0 }
 0x15b   : > { %v1343_v51 = vpop.f32.mrf.mxu0  ;;  %v1574_v52 = vpop.f32.mrf.mxu1 }
 0x15c   : > { %2840 = vst [vmem:[%s3707_s28] sm:$0xff] %v2839_v47   ;;  %v2019_v56 = vadd.f32 %v3691_v0, %v1583_v48  ;;  %v1575_v60 = vadd.f32 %v1574_v52, %v3644_v13  ;;  %v2080_v15 = vmax.f32 %v2016_v55, 0.0 }
 0x15d   : > { %v3719_v9 = vpop.f32.mrf.mxu0  ;;  %v3093_v63 = vpop.f32.mrf.mxu1 }
 0x15e   : > { %v2083_v4 = vmax.f32 %v2019_v56, 0.0  ;;  %v2017_v7 = vadd.f32 %v3691_v0, %v1575_v60  ;;  %v1596_v21 = vadd.f32 %v3093_v63, %v3662_v33 }
 0x15f   : > { %v1348_v11 = vpop.f32.mrf.mxu0  ;;  %v1587_v12 = vpop.f32.mrf.mxu1 }
 0x160   : > { %v2854_v16 = vpack.c.bf16 %v2083_v4, %v2082_v3  ;;  %v2081_v19 = vmax.f32 %v2017_v7, 0.0  ;;  %v1588_v20 = vadd.f32 %v1587_v12, %v3654_v25  ;;  %v2022_v27 = vadd.f32 %v3691_v0, %v1596_v21 }
 0x161   : > { %v3724_v1 = vpop.f32.mrf.mxu0  ;;  %v3094_v13 = vpop.f32.mrf.mxu1 }
 0x162   : > { %2998 = vst [vmem:[%s3707_s28 + $0x18] sm:$0xff] %v2854_v16   ;;  %v2849_v23 = vpack.c.bf16 %v2081_v19, %v2080_v15  ;;  %v1599_v28 = vadd.f32 %v3094_v13, %v3666_v37  ;;  %v2020_v33 = vadd.f32 %v3691_v0, %v1588_v20  ;;  %v2086_v36 = vmax.f32 %v2022_v27, 0.0 }
 0x163   : > { %v1351_v57 = vpop.f32.mrf.mxu0  ;;  %v1590_v31 = vpop.f32.mrf.mxu1 }
 0x164   : > { %2997 = vst [vmem:[%s3707_s28 + $0x10] sm:$0xff] %v2849_v23   ;;  %v2023_v32 = vadd.f32 %v3691_v0, %v1599_v28  ;;  %v1591_v5 = vadd.f32 %v1590_v31, %v3658_v29  ;;  %v2084_v47 = vmax.f32 %v2020_v33, 0.0 }
 0x165   : > { %v1354_v25 = vpop.f32.mrf.mxu0  ;;  %v3097_v35 = vpop.f32.mrf.mxu1 }
 0x166   : > { %v2087_v39 = vmax.f32 %v2023_v32, 0.0  ;;  %v2021_v61 = vadd.f32 %v3691_v0, %v1591_v5  ;;  %v1612_v40 = vadd.f32 %v3097_v35, %v3678_v49 }
 0x167   : > { %v1356_v37 = vpop.f32.mrf.mxu0  ;;  %v1603_v44 = vpop.f32.mrf.mxu1 }
 0x168   : > { %v2864_v17 = vpack.c.bf16 %v2087_v39, %v2086_v36  ;;  %v2085_v48 = vmax.f32 %v2021_v61, 0.0  ;;  %v1604_v51 = vadd.f32 %v1603_v44, %v3670_v41  ;;  %v2026_v56 = vadd.f32 %v3691_v0, %v1612_v40 }
 0x169   : > { %v1357_v52 = vpop.f32.mrf.mxu0  ;;  %v3098_v55 = vpop.f32.mrf.mxu1 }
 0x16a   : > { %3000 = vst [vmem:[%s3707_s28 + $0x28] sm:$0xff] %v2864_v17   ;;  %v2859_v29 = vpack.c.bf16 %v2085_v48, %v2084_v47  ;;  %v1615_v60 = vadd.f32 %v3098_v55, %v3682_v53  ;;  %v2024_v49 = vadd.f32 %v3691_v0, %v1604_v51  ;;  %v2090_v11 = vmax.f32 %v2026_v56, 0.0 }
 0x16b   : > { %v1359_v63 = vpop.f32.mrf.mxu0  ;;  %v1606_v3 = vpop.f32.mrf.mxu1 }
 0x16c   : > { %2999 = vst [vmem:[%s3707_s28 + $0x20] sm:$0xff] %v2859_v29   ;;  %v2027_v4 = vadd.f32 %v3691_v0, %v1615_v60  ;;  %v1607_v7 = vadd.f32 %v1606_v3, %v3674_v45  ;;  %v2088_v20 = vmax.f32 %v2024_v49, 0.0 }
 0x16d   : > { %v1362_v21 = vpop.f32.mrf.mxu0  ;;  %v3101_v41 = vpop.f32.mrf.mxu1 }
 0x16e   : > { %v2091_v12 = vmax.f32 %v2027_v4, 0.0  ;;  %v2025_v15 = vadd.f32 %v3691_v0, %v1607_v7  ;;  %v1628_v16 = vadd.f32 %v3101_v41, %v3701_v24 }
 0x16f   : > { %v1364_v53 = vpop.f32.mrf.mxu0  ;;  %v1619_v19 = vpop.f32.mrf.mxu1 }
 0x170   : > { %v2874_v13 = vpack.c.bf16 %v2091_v12, %v2090_v11  ;;  %v2089_v23 = vmax.f32 %v2025_v15, 0.0  ;;  %v1620_v27 = vadd.f32 %v1619_v19, %v3686_v59  ;;  %v2030_v31 = vadd.f32 %v3691_v0, %v1628_v16 }
 0x171   : > { %v1365_v28 = vpop.f32.mrf.mxu0  ;;  %v3102_v57 = vpop.f32.mrf.mxu1 }
 0x172   : > { %3002 = vst [vmem:[%s3707_s28 + $0x38] sm:$0xff] %v2874_v13   ;;  %v2869_v45 = vpack.c.bf16 %v2089_v23, %v2088_v20  ;;  %v1631_v33 = vadd.f32 %v3102_v57, %v3710_v43  ;;  %v2028_v24 = vadd.f32 %v3691_v0, %v1620_v27  ;;  %v2094_v61 = vmax.f32 %v2030_v31, 0.0 }
 0x173   : > { %v1367_v32 = vpop.f32.mrf.mxu0  ;;  %v1622_v5 = vpop.f32.mrf.mxu1 }
 0x174   : > { %3001 = vst [vmem:[%s3707_s28 + $0x30] sm:$0xff] %v2869_v45   ;;  %v2031_v35 = vadd.f32 %v3691_v0, %v1631_v33  ;;  %v1623_v36 = vadd.f32 %v1622_v5, %v3694_v8  ;;  %v2092_v17 = vmax.f32 %v2028_v24, 0.0 }
 0x175   : > { %v1370_v39 = vpop.f32.mrf.mxu0  ;;  %v3105_v59 = vpop.f32.mrf.mxu1 }
 0x176   : > { %v2095_v40 = vmax.f32 %v2031_v35, 0.0  ;;  %v2029_v37 = vadd.f32 %v3691_v0, %v1623_v36  ;;  %v1644_v44 = vadd.f32 %v3105_v59, %v1354_v25 }
 0x177   : > { %v1372_v47 = vpop.f32.mrf.mxu0  ;;  %v1635_v43 = vpop.f32.mrf.mxu1 }
 0x178   : > { %v2884_v48 = vpack.c.bf16 %v2095_v40, %v2094_v61  ;;  %v2093_v51 = vmax.f32 %v2029_v37, 0.0  ;;  %v1636_v55 = vadd.f32 %v1635_v43, %v3719_v9  ;;  %v2034_v8 = vadd.f32 %v3691_v0, %v1644_v44 }
 0x179   : > { %v1373_v29 = vpop.f32.mrf.mxu0  ;;  %v3106_v56 = vpop.f32.mrf.mxu1 }
 0x17a   : > { %3004 = vst [vmem:[%s3707_s28 + $0x48] sm:$0xff] %v2884_v48   ;;  %v2879_v60 = vpack.c.bf16 %v2093_v51, %v2092_v17  ;;  %v1647_v63 = vadd.f32 %v3106_v56, %v1357_v52  ;;  %v2032_v4 = vadd.f32 %v3691_v0, %v1636_v55  ;;  %v2098_v9 = vmax.f32 %v2034_v8, 0.0 }
 0x17b   : > { %v1375_v3 = vpop.f32.mrf.mxu0  ;;  %v1638_v49 = vpop.f32.mrf.mxu1 }
 0x17c   : > { %3003 = vst [vmem:[%s3707_s28 + $0x40] sm:$0xff] %v2879_v60   ;;  %v2035_v25 = vadd.f32 %v3691_v0, %v1647_v63  ;;  %v1639_v7 = vadd.f32 %v1638_v49, %v3724_v1  ;;  %v2096_v19 = vmax.f32 %v2032_v4, 0.0 }
 0x17d   : > { %v1378_v41 = vpop.f32.mrf.mxu0  ;;  %v3109_v11 = vpop.f32.mrf.mxu1 }
 0x17e   : > { %v2099_v12 = vmax.f32 %v2035_v25, 0.0  ;;  %v2033_v15 = vadd.f32 %v3691_v0, %v1639_v7  ;;  %v1660_v16 = vadd.f32 %v3109_v11, %v1370_v39 }
 0x17f   : > { %v1380_v53 = vpop.f32.mrf.mxu0  ;;  %v1651_v52 = vpop.f32.mrf.mxu1 }
 0x180   : > { %v2894_v20 = vpack.c.bf16 %v2099_v12, %v2098_v9  ;;  %v2097_v13 = vmax.f32 %v2033_v15, 0.0  ;;  %v1652_v23 = vadd.f32 %v1651_v52, %v1362_v21  ;;  %v2038_v1 = vadd.f32 %v3691_v0, %v1660_v16 }
 0x181   : > { %v1381_v27 = vpop.f32.mrf.mxu0  ;;  %v3110_v57 = vpop.f32.mrf.mxu1 }
 0x182   : > { %3006 = vst [vmem:[%s3707_s28 + $0x58] sm:$0xff] %v2894_v20   ;;  %v2889_v45 = vpack.c.bf16 %v2097_v13, %v2096_v19  ;;  %v1663_v31 = vadd.f32 %v3110_v57, %v1373_v29  ;;  %v2036_v5 = vadd.f32 %v3691_v0, %v1652_v23  ;;  %v2102_v59 = vmax.f32 %v2038_v1, 0.0 }
 0x183   : > { %v1383_v33 = vpop.f32.mrf.mxu0  ;;  %v1654_v32 = vpop.f32.mrf.mxu1 }
 0x184   : > { %3005 = vst [vmem:[%s3707_s28 + $0x50] sm:$0xff] %v2889_v45   ;;  %v2039_v24 = vadd.f32 %v3691_v0, %v1663_v31  ;;  %v1655_v35 = vadd.f32 %v1654_v32, %v1365_v28  ;;  %v2100_v47 = vmax.f32 %v2036_v5, 0.0 }
 0x185   : > { %v1386_v36 = vpop.f32.mrf.mxu0  ;;  %v3113_v39 = vpop.f32.mrf.mxu1 }
 0x186   : > { %v2103_v21 = vmax.f32 %v2039_v24, 0.0  ;;  %v2037_v61 = vadd.f32 %v3691_v0, %v1655_v35  ;;  %v1676_v40 = vadd.f32 %v3113_v39, %v1386_v36 }
 0x187   : > { %v1388_v37 = vpop.f32.mrf.mxu0  ;;  %v1667_v44 = vpop.f32.mrf.mxu1 }
 0x188   : > { %v2904_v43 = vpack.c.bf16 %v2103_v21, %v2102_v59  ;;  %v2101_v17 = vmax.f32 %v2037_v61, 0.0  ;;  %v1668_v48 = vadd.f32 %v1667_v44, %v1378_v41  ;;  %v2042_v28 = vadd.f32 %v3691_v0, %v1676_v40 }
 0x189   : > { %v1389_v51 = vpop.f32.mrf.mxu0  ;;  %v3114_v55 = vpop.f32.mrf.mxu1 }
 0x18a   : > { %3008 = vst [vmem:[%s3707_s28 + $0x68] sm:$0xff] %v2904_v43   ;;  %v2899_v29 = vpack.c.bf16 %v2101_v17, %v2100_v47  ;;  %v1679_v56 = vadd.f32 %v3114_v55, %v1389_v51  ;;  %v2040_v63 = vadd.f32 %v3691_v0, %v1668_v48  ;;  %v2106_v7 = vmax.f32 %v2042_v28, 0.0 }
 0x18b   : > { %v1391_v60 = vpop.f32.mrf.mxu0  ;;  %v1670_v8 = vpop.f32.mrf.mxu1 }
 0x18c   : > { %3007 = vst [vmem:[%s3707_s28 + $0x60] sm:$0xff] %v2899_v29   ;;  %v2043_v3 = vadd.f32 %v3691_v0, %v1679_v56  ;;  %v1671_v49 = vadd.f32 %v1670_v8, %v1381_v27  ;;  %v2104_v15 = vmax.f32 %v2040_v63, 0.0 }
 0x18d   : > { %v1394_v4 = vpop.f32.mrf.mxu0  ;;  %v3117_v25 = vpop.f32.mrf.mxu1 }
 0x18e   : > { %v2107_v41 = vmax.f32 %v2043_v3, 0.0  ;;  %v2041_v11 = vadd.f32 %v3691_v0, %v1671_v49 }
 0x18f   : > { %v1396_v9 = vpop.f32.mrf.mxu0  ;;  %v1683_v12 = vpop.f32.mrf.mxu1 }
 0x190   : > { %v2914_v16 = vpack.c.bf16 %v2107_v41, %v2106_v7  ;;  %v2105_v53 = vmax.f32 %v2041_v11, 0.0  ;;  %v1684_v52 = vadd.f32 %v1683_v12, %v1394_v4 }
 0x191   : > { %v1397_v19 = vpop.f32.mrf.mxu0  ;;  %v3118_v20 = vpop.f32.mrf.mxu1 }
 0x192   : > { %3010 = vst [vmem:[%s3707_s28 + $0x78] sm:$0xff] %v2914_v16   ;;  %v2909_v13 = vpack.c.bf16 %v2105_v53, %v2104_v15  ;;  %v2044_v27 = vadd.f32 %v3691_v0, %v1684_v52 }
 0x193   : > { %v1399_v23 = vpop.f32.mrf.mxu0  ;;  %v1686_v57 = vpop.f32.mrf.mxu1 }
 0x194   : > { %3009 = vst [vmem:[%s3707_s28 + $0x70] sm:$0xff] %v2909_v13   ;;  %v1687_v45 = vadd.f32 %v1686_v57, %v1397_v19  ;;  %v2108_v35 = vmax.f32 %v2044_v27, 0.0 }
 0x195   : > { %v1402_v1 = vpop.f32.mrf.mxu0  ;;  %v3121_v31 = vpop.f32.mrf.mxu1 }
 0x196   : > { %v2045_v33 = vadd.f32 %v3691_v0, %v1687_v45  ;;  %v1692_v32 = vadd.f32 %v3117_v25, %v1402_v1 }
 0x197   : > { %v1404_v5 = vpop.f32.mrf.mxu0  ;;  %v1699_v24 = vpop.f32.mrf.mxu1 }
 0x198   : > { %v2109_v36 = vmax.f32 %v2045_v33, 0.0  ;;  %v2046_v61 = vadd.f32 %v3691_v0, %v1692_v32 }
 0x199   : > { %v1405_v39 = vpop.f32.mrf.mxu0  ;;  %v3122_v59 = vpop.f32.mrf.mxu1 }
 0x19a   : > { %v2919_v21 = vpack.c.bf16 %v2109_v36, %v2108_v35  ;;  %v1695_v40 = vadd.f32 %v3118_v20, %v1405_v39  ;;  %v2110_v48 = vmax.f32 %v2046_v61, 0.0 }
 0x19b   : > { %v1407_v37 = vpop.f32.mrf.mxu0  ;;  %v1702_v44 = vpop.f32.mrf.mxu1 }
 0x19c   : > { %3011 = vst [vmem:[%s3707_s28 + $0x80] sm:$0xff] %v2919_v21   ;;  %v2047_v47 = vadd.f32 %v3691_v0, %v1695_v40 }
 0x19d   : > { %v1410_v43 = vpop.f32.mrf.mxu0  ;;  %v3125_v17 = vpop.f32.mrf.mxu1 }
 0x19e   : > { %v2111_v51 = vmax.f32 %v2047_v47, 0.0  ;;  %v1700_v55 = vadd.f32 %v1699_v24, %v1410_v43 }
 0x19f   : > { %v1412_v29 = vpop.f32.mrf.mxu0  ;;  %v1715_v28 = vpop.f32.mrf.mxu1 }
 0x1a0   : > { %v2924_v56 = vpack.c.bf16 %v2111_v51, %v2110_v48  ;;  %v2048_v63 = vadd.f32 %v3691_v0, %v1700_v55 }
 0x1a1   : > { %v1413_v60 = vpop.f32.mrf.mxu0  ;;  %v3781_v8 = vpop.f32.mrf.mxu1 }
 0x1a2   : > { %3012 = vst [vmem:[%s3707_s28 + $0x88] sm:$0xff] %v2924_v56   ;;  %v1703_v3 = vadd.f32 %v1702_v44, %v1413_v60  ;;  %v2112_v11 = vmax.f32 %v2048_v63, 0.0 }
 0x1a3   : > { %v1415_v49 = vpop.f32.mrf.mxu0  ;;  %v1718_v4 = vpop.f32.mrf.mxu1 }
 0x1a4   : > { %v2049_v25 = vadd.f32 %v3691_v0, %v1703_v3 }
 0x1a5   : > { %v1418_v7 = vpop.f32.mrf.mxu0  ;;  %v3786_v41 = vpop.f32.mrf.mxu1 }
 0x1a6   : > { %v2113_v9 = vmax.f32 %v2049_v25, 0.0  ;;  %v1708_v12 = vadd.f32 %v3121_v31, %v1418_v7 }
 0x1a7   : > { %v1420_v15 = vpop.f32.mrf.mxu0  ;;  %v3788_v16 = vpop.f32.mrf.mxu1 }
 0x1a8   : > { %v2929_v53 = vpack.c.bf16 %v2113_v9, %v2112_v11  ;;  %v2050_v20 = vadd.f32 %v3691_v0, %v1708_v12 }
 0x1a9   : > { %v1421_v52 = vpop.f32.mrf.mxu0  ;;  %v3790_v19 = vpop.f32.mrf.mxu1 }
 0x1aa   : > { %3013 = vst [vmem:[%s3707_s28 + $0x90] sm:$0xff] %v2929_v53   ;;  %v1711_v13 = vadd.f32 %v3122_v59, %v1421_v52  ;;  %v2114_v31 = vmax.f32 %v2050_v20, 0.0 }
 0x1ab   : > { %v1423_v23 = vpop.f32.mrf.mxu0  ;;  %v3794_v57 = vpop.f32.mrf.mxu1 }
 0x1ac   : > { %v2051_v27 = vadd.f32 %v3691_v0, %v1711_v13 }
 0x1ad   : > { %v1426_v45 = vpop.f32.mrf.mxu0  ;;  %v3133_v1 = vpop.f32.mrf.mxu1 }
 0x1ae   : > { %v2115_v33 = vmax.f32 %v2051_v27, 0.0  ;;  %v1716_v32 = vadd.f32 %v1715_v28, %v1426_v45  ;;  %v1756_v5 = vadd.f32 %v3133_v1, %v3636_v2 }
 0x1af   : > { %v1428_v24 = vpop.f32.mrf.mxu0  ;;  %v1747_v35 = vpop.f32.mrf.mxu1 }
 0x1b0   : > { %v2934_v36 = vpack.c.bf16 %v2115_v33, %v2114_v31  ;;  %v1748_v39 = vadd.f32 %v1747_v35, %v3630_v58  ;;  %v2052_v61 = vadd.f32 %v3691_v0, %v1716_v32  ;;  %v2062_v37 = vadd.f32 %v3691_v0, %v1756_v5 }
 0x1b1   : > { %v1429_v21 = vpop.f32.mrf.mxu0  ;;  %v3134_v59 = vpop.f32.mrf.mxu1 }
 0x1b2   : > { %3014 = vst [vmem:[%s3707_s28 + $0x98] sm:$0xff] %v2934_v36   ;;  %v1719_v40 = vadd.f32 %v1718_v4, %v1429_v21  ;;  %v1759_v44 = vadd.f32 %v3134_v59, %v3638_v6  ;;  %v2060_v48 = vadd.f32 %v3691_v0, %v1748_v39  ;;  %v2116_v28 = vmax.f32 %v2052_v61, 0.0 }
 0x1b3   : > { %v1431_v47 = vpop.f32.mrf.mxu0  ;;  %v1750_v43 = vpop.f32.mrf.mxu1  ;;  %v2126_v3 = vmax.f32 %v2062_v37, 0.0 }
 0x1b4   : > { %v2053_v2 = vadd.f32 %v3691_v0, %v1719_v40  ;;  %v1751_v51 = vadd.f32 %v1750_v43, %v3634_v62  ;;  %v2063_v58 = vadd.f32 %v3691_v0, %v1759_v44  ;;  %v2124_v7 = vmax.f32 %v2060_v48, 0.0 }
 0x1b5   : > { %v1434_v55 = vpop.f32.mrf.mxu0  ;;  %v3137_v29 = vpop.f32.mrf.mxu1 }
 0x1b6   : > { %v2117_v56 = vmax.f32 %v2053_v2, 0.0  ;;  %v2061_v60 = vadd.f32 %v3691_v0, %v1751_v51  ;;  %v1724_v63 = vadd.f32 %v3125_v17, %v1434_v55  ;;  %v2127_v6 = vmax.f32 %v2063_v58, 0.0 }
 0x1b7   : > { %v1772_v49 = vadd.f32 %v3137_v29, %v3648_v18  ;;  %v1436_v4 = vpop.f32.mrf.mxu0  ;;  %v1763_v25 = vpop.f32.mrf.mxu1 }
 0x1b8   : > { %v2939_v62 = vpack.c.bf16 %v2117_v56, %v2116_v28  ;;  %v2125_v11 = vmax.f32 %v2061_v60, 0.0  ;;  %v2964_v9 = vpack.c.bf16 %v2127_v6, %v2126_v3  ;;  %v1764_v12 = vadd.f32 %v1763_v25, %v3642_v10 }
 0x1b9   : > { %v1437_v15 = vpop.f32.mrf.mxu0  ;;  %v3138_v53 = vpop.f32.mrf.mxu1  ;;  %v2054_v17 = vadd.f32 %v3691_v0, %v1724_v63  ;;  %v2066_v18 = vadd.f32 %v3691_v0, %v1772_v49 }
 0x1ba   : > { %3015 = vst [vmem:[%s3707_s28 + $0xa0] sm:$0xff] %v2939_v62   ;;  %v2959_v52 = vpack.c.bf16 %v2125_v11, %v2124_v7  ;;  %v1727_v20 = vadd.f32 %v3781_v8, %v1437_v15  ;;  %3020 = vst [vmem:[%s3707_s28 + $0xc8] sm:$0xff] %v2964_v9   ;;  %v1775_v13 = vadd.f32 %v3138_v53, %v3652_v22 }
 0x1bb   : > { %v1439_v23 = vpop.f32.mrf.mxu0  ;;  %v1766_v27 = vpop.f32.mrf.mxu1  ;;  %v2064_v45 = vadd.f32 %v3691_v0, %v1764_v12  ;;  %v2118_v5 = vmax.f32 %v2054_v17, 0.0  ;;  %v2130_v35 = vmax.f32 %v2066_v18, 0.0 }
 0x1bc   : > { %3019 = vst [vmem:[%s3707_s28 + $0xc0] sm:$0xff] %v2959_v52   ;;  %v2055_v10 = vadd.f32 %v3691_v0, %v1727_v20  ;;  %v1767_v1 = vadd.f32 %v1766_v27, %v3646_v14  ;;  %v2067_v31 = vadd.f32 %v3691_v0, %v1775_v13 }
 0x1bd   : > { %v1442_v33 = vpop.f32.mrf.mxu0  ;;  %v3141_v32 = vpop.f32.mrf.mxu1  ;;  %v2128_v61 = vmax.f32 %v2064_v45, 0.0 }
 0x1be   : > { %v2119_v8 = vmax.f32 %v2055_v10, 0.0  ;;  %v2065_v24 = vadd.f32 %v3691_v0, %v1767_v1  ;;  %v1732_v22 = vadd.f32 %v3788_v16, %v1442_v33  ;;  %v2131_v36 = vmax.f32 %v2067_v31, 0.0 }
 0x1bf   : > { %v1788_v39 = vadd.f32 %v3141_v32, %v3664_v34  ;;  %v1444_v21 = vpop.f32.mrf.mxu0  ;;  %v1779_v59 = vpop.f32.mrf.mxu1 }
 0x1c0   : > { %v2944_v14 = vpack.c.bf16 %v2119_v8, %v2118_v5  ;;  %v2129_v40 = vmax.f32 %v2065_v24, 0.0  ;;  %v2974_v37 = vpack.c.bf16 %v2131_v36, %v2130_v35  ;;  %v1780_v44 = vadd.f32 %v1779_v59, %v3656_v26 }
 0x1c1   : > { %v1445_v47 = vpop.f32.mrf.mxu0  ;;  %v3142_v43 = vpop.f32.mrf.mxu1  ;;  %v2056_v16 = vadd.f32 %v3691_v0, %v1732_v22  ;;  %v2070_v34 = vadd.f32 %v3691_v0, %v1788_v39 }
 0x1c2   : > { %3016 = vst [vmem:[%s3707_s28 + $0xa8] sm:$0xff] %v2944_v14   ;;  %v2969_v48 = vpack.c.bf16 %v2129_v40, %v2128_v61  ;;  %v1735_v2 = vadd.f32 %v3794_v57, %v1445_v47  ;;  %3022 = vst [vmem:[%s3707_s28 + $0xd8] sm:$0xff] %v2974_v37   ;;  %v1791_v51 = vadd.f32 %v3142_v43, %v3668_v38 }
 0x1c3   : > { %v1447_v58 = vpop.f32.mrf.mxu0  ;;  %v1782_v55 = vpop.f32.mrf.mxu1  ;;  %v2068_v29 = vadd.f32 %v3691_v0, %v1780_v44  ;;  %v2120_v3 = vmax.f32 %v2056_v16, 0.0  ;;  %v2134_v49 = vmax.f32 %v2070_v34, 0.0 }
 0x1c4   : > { %3021 = vst [vmem:[%s3707_s28 + $0xd0] sm:$0xff] %v2969_v48   ;;  %v2057_v26 = vadd.f32 %v3691_v0, %v1735_v2  ;;  %v1783_v28 = vadd.f32 %v1782_v55, %v3660_v30  ;;  %v2071_v56 = vadd.f32 %v3691_v0, %v1791_v51 }
 0x1c5   : > { %v1450_v60 = vpop.f32.mrf.mxu0  ;;  %v3145_v63 = vpop.f32.mrf.mxu1  ;;  %v2132_v11 = vmax.f32 %v2068_v29, 0.0 }
 0x1c6   : > { %v2121_v57 = vmax.f32 %v2057_v26, 0.0  ;;  %v2069_v6 = vadd.f32 %v3691_v0, %v1783_v28  ;;  %v1740_v38 = vadd.f32 %v3786_v41, %v1450_v60  ;;  %v2135_v4 = vmax.f32 %v2071_v56, 0.0 }
 0x1c7   : > { %v1804_v25 = vadd.f32 %v3145_v63, %v3680_v50  ;;  %v1452_v7 = vpop.f32.mrf.mxu0  ;;  %v1795_v62 = vpop.f32.mrf.mxu1 }
 0x1c8   : > { %v2949_v30 = vpack.c.bf16 %v2121_v57, %v2120_v3  ;;  %v2133_v9 = vmax.f32 %v2069_v6, 0.0  ;;  %v2984_v12 = vpack.c.bf16 %v2135_v4, %v2134_v49  ;;  %v1796_v15 = vadd.f32 %v1795_v62, %v3672_v42 }
 0x1c9   : > { %v1453_v53 = vpop.f32.mrf.mxu0  ;;  %v3146_v52 = vpop.f32.mrf.mxu1  ;;  %v2058_v41 = vadd.f32 %v3691_v0, %v1740_v38  ;;  %v2074_v50 = vadd.f32 %v3691_v0, %v1804_v25 }
 0x1ca   : > { %3017 = vst [vmem:[%s3707_s28 + $0xb0] sm:$0xff] %v2949_v30   ;;  %v2979_v17 = vpack.c.bf16 %v2133_v9, %v2132_v11  ;;  %v1743_v20 = vadd.f32 %v3790_v19, %v1453_v53  ;;  %3024 = vst [vmem:[%s3707_s28 + $0xe8] sm:$0xff] %v2984_v12   ;;  %v1807_v18 = vadd.f32 %v3146_v52, %v3684_v54 }
 0x1cb   : > { %v1455_v13 = vpop.f32.mrf.mxu0  ;;  %v1798_v23 = vpop.f32.mrf.mxu1  ;;  %v2072_v42 = vadd.f32 %v3691_v0, %v1796_v15  ;;  %v2122_v19 = vmax.f32 %v2058_v41, 0.0  ;;  %v2138_v33 = vmax.f32 %v2074_v50, 0.0 }
 0x1cc   : > { %3023 = vst [vmem:[%s3707_s28 + $0xe0] sm:$0xff] %v2979_v17   ;;  %v2059_v27 = vadd.f32 %v3691_v0, %v1743_v20  ;;  %v1799_v45 = vadd.f32 %v1798_v23, %v3676_v46  ;;  %v2075_v10 = vadd.f32 %v3691_v0, %v1807_v18 }
 0x1cd   : > { %v2136_v32 = vmax.f32 %v2072_v42, 0.0 }
 0x1ce   : > { %v2123_v1 = vmax.f32 %v2059_v27, 0.0  ;;  %v2073_v31 = vadd.f32 %v3691_v0, %v1799_v45  ;;  %v2139_v54 = vmax.f32 %v2075_v10, 0.0 }
 0x1d0   : > { %v2954_v5 = vpack.c.bf16 %v2123_v1, %v2122_v19  ;;  %v2137_v8 = vmax.f32 %v2073_v31, 0.0  ;;  %v2994_v24 = vpack.c.bf16 %v2139_v54, %v2138_v33 }
 0x1d2   : > { %3018 = vst [vmem:[%s3707_s28 + $0xb8] sm:$0xff] %v2954_v5   ;;  %v2989_v22 = vpack.c.bf16 %v2137_v8, %v2136_v32  ;;  %3026 = vst [vmem:[%s3707_s28 + $0xf8] sm:$0xff] %v2994_v24  }
 0x1d4   : > { %3025 = vst [vmem:[%s3707_s28 + $0xf0] sm:$0xff] %v2989_v22  }
 0x1d5 PF: > { %s13_s14 = sadd.s32 1, %s3379_s14   ;;  %s3868_s12 = smov %s3375_s13 }
 0x1d6   : > { %p10_p5 = scmp.ge.s32.totalorder %s13_s14, 6   ;;  %s3869_s13 = smov %s3871_s15 }
 0x1d8   :  { %12 = sbr.rel (!%p10_p5) target bundleno = 2 (0x2), region = 76 }

</bundles_post_ra>
